<compile_context>
chip_gen: v7x
topology: tpu7x:2x2x1
jax: 0.10.0
libtpu: 0.0.40
codegen_flags: <defaults>
</compile_context>

<pallas_src>
import functools

import jax
import jax.numpy as jnp
from jax.experimental import pallas as pl
from jax.experimental.pallas import tpu as pltpu


def _channel_attention_kernel(x_ref, w1_ref, b1_ref, w2_ref, b2_ref, out_ref,
                              sum_acc, max_acc, *, batch_tile, hw, tile_hw,
                              mask_tail):
    # x_ref: (Bt, C, TILE_HW)  w1: (C, mid)  b1: (1, mid)  w2: (mid, C)  b2: (1, C)
    k = pl.program_id(1)               # hw (reduction) axis, innermost
    n_k = pl.num_programs(1)

    @pl.when(k == 0)
    def _init():
        sum_acc[...] = jnp.zeros_like(sum_acc)
        max_acc[...] = jnp.full_like(max_acc, -jnp.inf)

    x = x_ref[...].astype(jnp.float32)  # (Bt, C, TILE_HW)

    def _accumulate(x_sum, x_max):
        # Hot path: one add + one max per loaded element into resident accs.
        # (Lane-wide (Bt, C, 128) accumulators would remove the per-step
        # cross-lane reduce, but the VPU/XLU work here hides comfortably under
        # the HBM stream at the tile sizes picked below.)
        sum_acc[...] = sum_acc[...] + jnp.sum(x_sum, axis=-1)              # (Bt, C)
        max_acc[...] = jnp.maximum(max_acc[...], jnp.max(x_max, axis=-1))  # (Bt, C)

    if mask_tail:
        # Steady-state steps: no masking work at all.
        @pl.when(k < n_k - 1)
        def _steady():
            _accumulate(x, x)

        # Last hw step only: mask the padded columns (0 for sum, -inf for max).
        @pl.when(k == n_k - 1)
        def _tail():
            col = jax.lax.broadcasted_iota(jnp.int32, x.shape, dimension=2)
            valid = (col + k * tile_hw) < hw
            _accumulate(jnp.where(valid, x, 0.0), jnp.where(valid, x, -jnp.inf))
    else:
        _accumulate(x, x)

    @pl.when(k == n_k - 1)
    def _finalize():
        inv_hw = jnp.float32(1.0 / hw)          # compile-time constant
        avg = sum_acc[...] * inv_hw             # (Bt, C)
        mx = max_acc[...]                       # (Bt, C)

        # Fused MLP: one matmul pair over the stacked (2*Bt, C) inputs.
        v = jnp.concatenate([avg, mx], axis=0)  # (2*Bt, C)
        h = jnp.dot(v, w1_ref[...], preferred_element_type=jnp.float32) + b1_ref[...]
        h = jnp.maximum(h, 0.0)                 # ReLU
        y = jnp.dot(h, w2_ref[...], preferred_element_type=jnp.float32) + b2_ref[...]

        logits = y[:batch_tile, :] + y[batch_tile:, :]                     # (Bt, C)
        out_ref[...] = jax.nn.sigmoid(logits).astype(out_ref.dtype)


def _vmem_budget():
    """Return (per_buffer_bytes, vmem_limit_cap) tuned per TPU generation.

    v5e/v6e have 128 MiB physical VMEM -> larger streaming tiles amortize the
    ~0.35us/grid-step overhead; v7x has 64 MiB -> stay conservative.
    """
    cap = None
    try:
        info_fn = getattr(pltpu, "get_tpu_info", None)
        cap = getattr(info_fn(), "vmem_capacity_bytes", None) if info_fn else None
    except Exception:
        cap = None
    if cap is not None and cap >= 128 * 1024 * 1024:     # v5e / v6e
        return 24 * 1024 * 1024, 96 * 1024 * 1024
    return 8 * 1024 * 1024, 48 * 1024 * 1024             # v7x (or unknown)


def _pick_tiles(b, c, hw, per_buffer_bytes, elem_bytes):
    """Pick (tile_b, tile_hw) so one x block fits the per-buffer budget.

    tile_hw is HW (full extent) or a multiple of 128; tile_b is B or a
    multiple of 8 (keeps the (tile_b, C) output block tile-aligned).
    """
    # Whole array as one block.
    if b * c * hw * elem_bytes <= per_buffer_bytes:
        return b, hw
    # Keep all batches together if a >=128-lane hw tile still fits.
    if b * c * 128 * elem_bytes <= per_buffer_bytes:
        mult = per_buffer_bytes // (b * c * 128 * elem_bytes)
        return b, min(mult, hw // 128) * 128
    # Large B*C: tile the batch too. Keep hw rows reasonably long for DMA
    # efficiency (full HW if small, else 512 lanes).
    tile_hw = hw if hw <= 512 else 512
    bt = per_buffer_bytes // (c * tile_hw * elem_bytes)
    if bt >= 8:
        bt = min((bt // 8) * 8, b)
    else:
        bt = min(8, b)   # may slightly exceed the budget for extreme C; accepted
    return bt, tile_hw


def channel_attention(x, w1, b1, w2, b2, *, tile_hw=None, tile_b=None):
    """x: (B, C, H, W) float. Returns (B, C, 1, 1) attention map (float32)."""
    B, C, H, W = x.shape
    HW = H * W
    mid = w1.shape[1]

    x_flat = x.reshape(B, C, HW)
    b1_2d = b1.reshape(1, mid)
    b2_2d = b2.reshape(1, C)

    elem_bytes = x_flat.dtype.itemsize
    per_buffer_bytes, vmem_cap = _vmem_budget()
    auto_b, auto_hw = _pick_tiles(B, C, HW, per_buffer_bytes, elem_bytes)
    if tile_b is None:
        tile_b = auto_b
    if tile_hw is None:
        tile_hw = auto_hw
    assert tile_hw == HW or tile_hw % 128 == 0, "tile_hw must be HW or a multiple of 128"
    assert tile_b == B or tile_b % 8 == 0, "tile_b must be B or a multiple of 8"

    grid = (pl.cdiv(B, tile_b), pl.cdiv(HW, tile_hw))   # (parallel batch, arbitrary hw)
    mask_tail = (HW % tile_hw) != 0

    kernel = functools.partial(
        _channel_attention_kernel,
        batch_tile=tile_b, hw=HW, tile_hw=tile_hw, mask_tail=mask_tail)

    # VMEM budget: double-buffered x tile + (double-buffered) weights + output
    # block + accumulators, with slack. Clamped to the per-generation cap.
    tile_bytes = tile_b * C * tile_hw * elem_bytes
    weight_bytes = (C * mid + mid + mid * C + C) * 4
    out_bytes = tile_b * C * 4
    vmem_need = 2 * tile_bytes + 2 * weight_bytes + 2 * out_bytes + 2 * tile_b * C * 4
    vmem_limit = vmem_need + max(vmem_need // 4, 4 * 1024 * 1024)
    vmem_limit = int(min(max(vmem_limit, 32 * 1024 * 1024), vmem_cap))

    cost = pl.CostEstimate(
        flops=2 * B * C * HW + 8 * B * C * mid,
        transcendentals=B * C,
        bytes_accessed=(B * C * HW * elem_bytes + weight_bytes + B * C * 4),
    )

    out = pl.pallas_call(
        kernel,
        out_shape=jax.ShapeDtypeStruct((B, C), jnp.float32),
        grid_spec=pltpu.PrefetchScalarGridSpec(
            num_scalar_prefetch=0,
            grid=grid,
            in_specs=[
                pl.BlockSpec((tile_b, C, tile_hw), lambda b, k: (b, 0, k)),
                pl.BlockSpec((C, mid), lambda b, k: (0, 0)),
                pl.BlockSpec((1, mid), lambda b, k: (0, 0)),
                pl.BlockSpec((mid, C), lambda b, k: (0, 0)),
                pl.BlockSpec((1, C), lambda b, k: (0, 0)),
            ],
            out_specs=pl.BlockSpec((tile_b, C), lambda b, k: (b, 0)),
            scratch_shapes=[
                pltpu.VMEM((tile_b, C), jnp.float32),   # running sum
                pltpu.VMEM((tile_b, C), jnp.float32),   # running max
            ],
        ),
        compiler_params=pltpu.CompilerParams(
            # batch axis shards across TensorCores (v7x megacore); hw axis is
            # the reduction with resident accumulators.
            dimension_semantics=("parallel", "arbitrary"),
            vmem_limit_bytes=vmem_limit,
        ),
        cost_estimate=cost,
    )(x_flat, w1, b1_2d, w2, b2_2d)

    return out.reshape(B, C, 1, 1)


def init_params(key, channel, reduction=8):
    mid = channel // reduction
    k1, k2, k3, k4 = jax.random.split(key, 4)
    # Deterministic synthetic init (roughly PyTorch Linear's uniform scale).
    lim1 = 1.0 / (channel ** 0.5)
    lim2 = 1.0 / (mid ** 0.5)
    w1 = jax.random.uniform(k1, (channel, mid), jnp.float32, -lim1, lim1)
    b1 = jax.random.uniform(k2, (mid,), jnp.float32, -lim1, lim1)
    w2 = jax.random.uniform(k3, (mid, channel), jnp.float32, -lim2, lim2)
    b2 = jax.random.uniform(k4, (channel,), jnp.float32, -lim2, lim2)
    return w1, b1, w2, b2


def reference(x, w1, b1, w2, b2):
    B, C, H, W = x.shape
    avg = jnp.mean(x.astype(jnp.float32), axis=(2, 3))
    mx = jnp.max(x.astype(jnp.float32), axis=(2, 3))

    def mlp(v):
        return jnp.maximum(v @ w1 + b1, 0.0) @ w2 + b2

    return jax.nn.sigmoid(mlp(avg) + mlp(mx)).reshape(B, C, 1, 1)


if __name__ == "__main__":
    key = jax.random.PRNGKey(0)
    kx1, kx2, kx3, kp1, kp2, kp3 = jax.random.split(key, 6)

    # Case 1: evenly tiled spatial axis (HW=256, tile_hw=128 -> 2 accumulation
    # steps), exercises the unmasked multi-step accumulator path.
    B, C, H, W = 2, 16, 16, 16          # channel=16, reduction=8 -> mid=2
    x = jax.random.normal(kx1, (B, C, H, W), jnp.float32)
    w1, b1, w2, b2 = init_params(kp1, C, reduction=8)
    out = jax.block_until_ready(channel_attention(x, w1, b1, w2, b2, tile_hw=128))
    ref = reference(x, w1, b1, w2, b2)
    assert out.shape == (B, C, 1, 1)
    assert jnp.allclose(out, ref, atol=1e-5, rtol=1e-5), (
        f"case1 max abs err = {jnp.max(jnp.abs(out - ref))}")

    # Case 2: ragged spatial axis (HW=400, tile_hw=128 -> masked tail tile on
    # the last step only), exercises the pl.when-gated padding mask.
    B2, C2, H2, W2 = 2, 32, 20, 20      # channel=32, reduction=8 -> mid=4
    x2 = jax.random.normal(kx2, (B2, C2, H2, W2), jnp.float32)
    w1b, b1b, w2b, b2b = init_params(kp2, C2, reduction=8)
    out2 = jax.block_until_ready(channel_attention(x2, w1b, b1b, w2b, b2b, tile_hw=128))
    ref2 = reference(x2, w1b, b1b, w2b, b2b)
    assert out2.shape == (B2, C2, 1, 1)
    assert jnp.allclose(out2, ref2, atol=1e-5, rtol=1e-5), (
        f"case2 max abs err = {jnp.max(jnp.abs(out2 - ref2))}")

    # Case 3: batch-tiled grid (B=16 split into two (8, C) blocks on the
    # parallel axis) plus 2 hw steps, exercises per-batch-block accumulators
    # and batch-block indexed output.
    B3, C3, H3, W3 = 16, 32, 16, 16
    x3 = jax.random.normal(kx3, (B3, C3, H3, W3), jnp.float32)
    w1c, b1c, w2c, b2c = init_params(kp3, C3, reduction=8)
    out3 = jax.block_until_ready(
        channel_attention(x3, w1c, b1c, w2c, b2c, tile_hw=128, tile_b=8))
    ref3 = reference(x3, w1c, b1c, w2c, b2c)
    assert out3.shape == (B3, C3, 1, 1)
    assert jnp.allclose(out3, ref3, atol=1e-5, rtol=1e-5), (
        f"case3 max abs err = {jnp.max(jnp.abs(out3 - ref3))}")

    print("KERNEL_OK")
</pallas_src>

<mosaic_0001>
module attributes {stable_mosaic.version = 11 : i64} {
  func.func @_channel_attention_kernel(%arg0: i32, %arg1: i32, %arg2: memref<2x16x128xf32, #tpu.memory_space<vmem>>, %arg3: memref<16x2xf32, #tpu.memory_space<vmem>>, %arg4: memref<1x2xf32, #tpu.memory_space<vmem>>, %arg5: memref<2x16xf32, #tpu.memory_space<vmem>>, %arg6: memref<1x16xf32, #tpu.memory_space<vmem>>, %arg7: memref<2x16xf32, #tpu.memory_space<vmem>>, %arg8: memref<2x16xf32, #tpu.memory_space<vmem>>, %arg9: memref<2x16xf32, #tpu.memory_space<vmem>>) attributes {dimension_semantics = [#tpu.dimension_semantics<parallel>, #tpu.dimension_semantics<arbitrary>], iteration_bounds = array<i64: 1, 2>, scalar_prefetch = 0 : i64, scratch_operands = 2 : i64, tpu.core_type = #tpu.core_type<tc>, window_params = [{transform_indices = @transform_0, window_bounds = array<i64: 2, 16, 128>}, {pipeline_mode = #tpu.pipeline_mode<synchronous>, transform_indices = @transform_1, window_bounds = array<i64: 16, 2>}, {pipeline_mode = #tpu.pipeline_mode<synchronous>, transform_indices = @transform_2, window_bounds = array<i64: 1, 2>}, {pipeline_mode = #tpu.pipeline_mode<synchronous>, transform_indices = @transform_3, window_bounds = array<i64: 2, 16>}, {pipeline_mode = #tpu.pipeline_mode<synchronous>, transform_indices = @transform_4, window_bounds = array<i64: 1, 16>}, {transform_indices = @transform_5, window_bounds = array<i64: 2, 16>}]} {
    %c0_i32 = arith.constant 0 : i32
    %0 = arith.cmpi eq, %arg1, %c0_i32 : i32
    %1 = arith.extui %0 : i1 to i32
    %c0_i32_0 = arith.constant 0 : i32
    %2 = arith.cmpi ne, %1, %c0_i32_0 : i32
    scf.if %2 {
      %cst_13 = arith.constant 0.000000e+00 : f32
      %15 = vector.broadcast %cst_13 : f32 to vector<2x16xf32>
      %c0_14 = arith.constant 0 : index
      %c0_15 = arith.constant 0 : index
      %16 = vector.load %arg8[%c0_14, %c0_15] : memref<2x16xf32, #tpu.memory_space<vmem>>, vector<2x16xf32>
      tpu.vector_store %arg8[%c0_14, %c0_15], %15 {strides = array<i32>} : memref<2x16xf32, #tpu.memory_space<vmem>>, vector<2x16xf32>,
      %cst_16 = arith.constant 0xFF800000 : f32
      %17 = vector.broadcast %cst_16 : f32 to vector<2x16xf32>
      %c0_17 = arith.constant 0 : index
      %c0_18 = arith.constant 0 : index
      %18 = vector.load %arg9[%c0_17, %c0_18] : memref<2x16xf32, #tpu.memory_space<vmem>>, vector<2x16xf32>
      tpu.vector_store %arg9[%c0_17, %c0_18], %17 {strides = array<i32>} : memref<2x16xf32, #tpu.memory_space<vmem>>, vector<2x16xf32>,
    } else {
    }
    %c0 = arith.constant 0 : index
    %c0_1 = arith.constant 0 : index
    %c0_2 = arith.constant 0 : index
    %3 = vector.load %arg2[%c0, %c0_1, %c0_2] : memref<2x16x128xf32, #tpu.memory_space<vmem>>, vector<2x16x128xf32>
    %c0_3 = arith.constant 0 : index
    %c0_4 = arith.constant 0 : index
    %4 = vector.load %arg8[%c0_3, %c0_4] : memref<2x16xf32, #tpu.memory_space<vmem>>, vector<2x16xf32>
    %cst = arith.constant dense<0.000000e+00> : vector<2x16xf32>
    %5 = vector.multi_reduction <add>, %3, %cst [2] : vector<2x16x128xf32> to vector<2x16xf32>
    %6 = arith.addf %4, %5 : vector<2x16xf32>
    %c0_5 = arith.constant 0 : index
    %c0_6 = arith.constant 0 : index
    %7 = vector.load %arg8[%c0_5, %c0_6] : memref<2x16xf32, #tpu.memory_space<vmem>>, vector<2x16xf32>
    tpu.vector_store %arg8[%c0_5, %c0_6], %6 {strides = array<i32>} : memref<2x16xf32, #tpu.memory_space<vmem>>, vector<2x16xf32>,
    %c0_7 = arith.constant 0 : index
    %c0_8 = arith.constant 0 : index
    %8 = vector.load %arg9[%c0_7, %c0_8] : memref<2x16xf32, #tpu.memory_space<vmem>>, vector<2x16xf32>
    %cst_9 = arith.constant dense<0xFF800000> : vector<2x16xf32>
    %9 = vector.multi_reduction <maximumf>, %3, %cst_9 [2] : vector<2x16x128xf32> to vector<2x16xf32>
    %10 = arith.maximumf %8, %9 : vector<2x16xf32>
    %c0_10 = arith.constant 0 : index
    %c0_11 = arith.constant 0 : index
    %11 = vector.load %arg9[%c0_10, %c0_11] : memref<2x16xf32, #tpu.memory_space<vmem>>, vector<2x16xf32>
    tpu.vector_store %arg9[%c0_10, %c0_11], %10 {strides = array<i32>} : memref<2x16xf32, #tpu.memory_space<vmem>>, vector<2x16xf32>,
    %c1_i32 = arith.constant 1 : i32
    %12 = arith.cmpi eq, %arg1, %c1_i32 : i32
    %13 = arith.extui %12 : i1 to i32
    %c0_i32_12 = arith.constant 0 : i32
    %14 = arith.cmpi ne, %13, %c0_i32_12 : i32
    scf.if %14 {
      %c0_13 = arith.constant 0 : index
      %c0_14 = arith.constant 0 : index
      %15 = vector.load %arg8[%c0_13, %c0_14] : memref<2x16xf32, #tpu.memory_space<vmem>>, vector<2x16xf32>
      %cst_15 = arith.constant 3.906250e-03 : f32
      %16 = vector.broadcast %cst_15 : f32 to vector<2x16xf32>
      %17 = arith.mulf %15, %16 : vector<2x16xf32>
      %c0_16 = arith.constant 0 : index
      %c0_17 = arith.constant 0 : index
      %18 = vector.load %arg9[%c0_16, %c0_17] : memref<2x16xf32, #tpu.memory_space<vmem>>, vector<2x16xf32>
      %19 = tpu.concatenate %17, %18 in 0 : vector<2x16xf32>, vector<2x16xf32> -> vector<4x16xf32>
      %c0_18 = arith.constant 0 : index
      %c0_19 = arith.constant 0 : index
      %20 = vector.load %arg3[%c0_18, %c0_19] : memref<16x2xf32, #tpu.memory_space<vmem>>, vector<16x2xf32>
      %cst_20 = arith.constant dense<0.000000e+00> : vector<4x2xf32>
      %21 = tpu.matmul %19, %20, %cst_20 {dimension_numbers = #tpu.dot_dimension_numbers<[1], [0], [0], [1], [0, 0, 1, 1], [], []>} : vector<4x16xf32>, vector<16x2xf32>, vector<4x2xf32> -> vector<4x2xf32>
      %c0_21 = arith.constant 0 : index
      %c0_22 = arith.constant 0 : index
      %22 = vector.load %arg4[%c0_21, %c0_22] : memref<1x2xf32, #tpu.memory_space<vmem>>, vector<1x2xf32>
      %23 = vector.broadcast %22 : vector<1x2xf32> to vector<4x2xf32>
      %24 = arith.addf %21, %23 : vector<4x2xf32>
      %cst_23 = arith.constant 0.000000e+00 : f32
      %25 = vector.broadcast %cst_23 : f32 to vector<4x2xf32>
      %26 = arith.maximumf %24, %25 : vector<4x2xf32>
      %c0_24 = arith.constant 0 : index
      %c0_25 = arith.constant 0 : index
      %27 = vector.load %arg5[%c0_24, %c0_25] : memref<2x16xf32, #tpu.memory_space<vmem>>, vector<2x16xf32>
      %cst_26 = arith.constant dense<0.000000e+00> : vector<4x16xf32>
      %28 = tpu.matmul %26, %27, %cst_26 {dimension_numbers = #tpu.dot_dimension_numbers<[1], [0], [0], [1], [0, 0, 1, 1], [], []>} : vector<4x2xf32>, vector<2x16xf32>, vector<4x16xf32> -> vector<4x16xf32>
      %c0_27 = arith.constant 0 : index
      %c0_28 = arith.constant 0 : index
      %29 = vector.load %arg6[%c0_27, %c0_28] : memref<1x16xf32, #tpu.memory_space<vmem>>, vector<1x16xf32>
      %30 = vector.broadcast %29 : vector<1x16xf32> to vector<4x16xf32>
      %31 = arith.addf %28, %30 : vector<4x16xf32>
      %32 = vector.extract_strided_slice %31 {offsets = [0, 0], sizes = [2, 16], strides = [1, 1]} : vector<4x16xf32> to vector<2x16xf32>
      %33 = vector.extract_strided_slice %31 {offsets = [2, 0], sizes = [2, 16], strides = [1, 1]} : vector<4x16xf32> to vector<2x16xf32>
      %34 = arith.addf %32, %33 : vector<2x16xf32>
      %35 = arith.negf %34 : vector<2x16xf32>
      %36 = math.exp %35 : vector<2x16xf32>
      %cst_29 = arith.constant 1.000000e+00 : f32
      %37 = vector.broadcast %cst_29 : f32 to vector<2x16xf32>
      %38 = arith.addf %37, %36 : vector<2x16xf32>
      %39 = arith.divf %37, %38 : vector<2x16xf32>
      %c0_30 = arith.constant 0 : index
      %c0_31 = arith.constant 0 : index
      %40 = vector.load %arg7[%c0_30, %c0_31] : memref<2x16xf32, #tpu.memory_space<vmem>>, vector<2x16xf32>
      tpu.vector_store %arg7[%c0_30, %c0_31], %39 {strides = array<i32>} : memref<2x16xf32, #tpu.memory_space<vmem>>, vector<2x16xf32>,
    } else {
    }
    return
  }
  func.func @transform_0(%arg0: i32, %arg1: i32) -> (i32, i32, i32) {
    %c0_i32 = arith.constant 0 : i32
    %c0_i32_0 = arith.constant 0 : i32
    return %arg0, %c0_i32, %arg1 : i32, i32, i32
  }
  func.func @transform_1(%arg0: i32, %arg1: i32) -> (i32, i32) {
    %c0_i32 = arith.constant 0 : i32
    %c0_i32_0 = arith.constant 0 : i32
    %c0_i32_1 = arith.constant 0 : i32
    return %c0_i32, %c0_i32_0 : i32, i32
  }
  func.func @transform_2(%arg0: i32, %arg1: i32) -> (i32, i32) {
    %c0_i32 = arith.constant 0 : i32
    %c0_i32_0 = arith.constant 0 : i32
    %c0_i32_1 = arith.constant 0 : i32
    return %c0_i32, %c0_i32_0 : i32, i32
  }
  func.func @transform_3(%arg0: i32, %arg1: i32) -> (i32, i32) {
    %c0_i32 = arith.constant 0 : i32
    %c0_i32_0 = arith.constant 0 : i32
    %c0_i32_1 = arith.constant 0 : i32
    return %c0_i32, %c0_i32_0 : i32, i32
  }
  func.func @transform_4(%arg0: i32, %arg1: i32) -> (i32, i32) {
    %c0_i32 = arith.constant 0 : i32
    %c0_i32_0 = arith.constant 0 : i32
    %c0_i32_1 = arith.constant 0 : i32
    return %c0_i32, %c0_i32_0 : i32, i32
  }
  func.func @transform_5(%arg0: i32, %arg1: i32) -> (i32, i32) {
    %c0_i32 = arith.constant 0 : i32
    %c0_i32_0 = arith.constant 0 : i32
    return %arg0, %c0_i32 : i32, i32
  }
}

</mosaic_0001>

<bundles_post_ra>
// kernel: tpu_custom_call.1
= control target key start
LH: loop header
LB: loop body
LE: loop exit
PB: predicated region body
PF: predicated region fallthrough
CT: control target
= control target key end

     0   :  { %10 = vsyncpa [#allocation5], 0  ;;  %s1046_s0 = inlined_call_operand.hbm [shape: f32[2,16,256], index: 0, kind: input, shape index: {}]   ;;  %s1047_s1 = inlined_call_operand.vmem [shape: f32[16,2], index: 1, kind: input, shape index: {}]   ;;  %s1048_s2 = inlined_call_operand.vmem [shape: f32[1,2], index: 2, kind: input, shape index: {}]   ;;  %s1049_s3 = inlined_call_operand.vmem [shape: f32[2,16], index: 3, kind: input, shape index: {}]   ;;  %s1050_s4 = inlined_call_operand.vmem [shape: f32[1,16], index: 4, kind: input, shape index: {}]   ;;  %s1051_s5 = inlined_call_operand.hbm [shape: f32[2,16], index: 5, kind: output, shape index: {}]  }
   0x1   :  { %12 = vsyncpa [#allocation5 + $0x1], 0 }
   0x2   :  { %13 = vsyncpa [#allocation6], 0  ;;  %s869_s18 = smov 0   ;;  %s871_s19 = smov 0  }
   0x3   :  { %s873_s20 = smov 0   ;;  %s875_s21 = smov 0  }
   0x4   :  { %s877_s22 = smov 0   ;;  %s879_s23 = smov 0  }
   0x5 LB: > { %s604_s24 = sadd.s32 4294967295, %s827_s23   ;;  %s28_s25 = sadd.s32 1, %s823_s22  ;;  %s827_s23 = sphi %s879_s23, %s19_s23   ;;  %s823_s22 = sphi %s877_s22, %s1061_s22   ;;  %s819_s21 = sphi %s875_s21, %s1060_s21   ;;  %s815_s20 = sphi %s873_s20, %s1059_s20   ;;  %s811_s19 = sphi %s871_s19, %s1058_s19   ;;  %s807_s18 = sphi %s869_s18, %s1057_s18  }
   0x6   : > { %p29_p0 = scmp.ge.s32.totalorder %s28_s25, 2  ;;  %s40_s26 = sadd.s32 1, %s815_s20 }
   0x7   : > { %p47_p1 = scmp.ne.s32.totalorder %s815_s20, %s811_s19  ;;  %p48_p2 = scmp.eq.s32.totalorder %s827_s23, 0 }
   0x8   : > { %s1063_s25 = smov (%p29_p0, %s28_s25), 0  ;;  %p53_p4 = scmp.ne.s32.totalorder %s811_s19, %s807_s18 }
   0x9   : > { %p905_p3 = por %p48_p2, %p47_p1  ;;  %s36_s28 = ssub.s32 %s823_s22, %s1063_s25 }
   0xa   : > { %p54_p5 = scmp.eq.s32.totalorder %s604_s24, 0  ;;  %p38_p6 = scmp.eq.s32.totalorder %s36_s28, 0 }
   0xb   : > { %p653_p8 = scmp.lt.s32.totalorder %s827_s23, 2  ;;  %s199_s6 = sand.u32 1, %s815_s20  }
   0xc   : > { %p914_p7 = por %p54_p5, %p53_p4  ;;  %s608_s7 = sshll.u32 %s823_s22, 7 }
   0xd   : > { %s920_s30 = scalar_select %p38_p6, %s815_s20, %s40_s26  }
   0xe   : > { %s607_s8 = sshll.u32 %s199_s6, 5  ;;  %s927_s11 = scalar_lea.hbm %s1046_s0, %s608_s7 }
   0xf   : > { %s203_s12 = scalar_lea.vmem [#allocation4], %s607_s8  ;;  %p931_p9 = pnand %p653_p8, %p905_p3 }
  0x10   : > { %s212_s13 = sshll.u32 %s203_s12, 4  ;;  %s938_s15 = scalar_lea.sflag [#allocation5], %s199_s6  ;;  %s935_s13 = int_to_ptr.vmem [resolvable:$true] %s212_s13 }
  0x11   : > { %s717_s16 = scalar_lea.hbm %s927_s11, 512  ;;  %p719_p12 = pneg %p931_p9 }
  0x12   : > { %p718_p11 = scmp.ne.s32.totalorder %s927_s11, %s717_s16  ;;  %s722_s26 = scalar_lea.hbm %s1046_s0, 1024 }
  0x13   : > { %p723_p1 = scmp.lt.u32.totalorder %s927_s11, %s1046_s0  ;;  %p724_p2 = scmp.lt.u32.totalorder %s722_s26, %s717_s16 }
  0x14   : > { %p720_p13 = pnand %p719_p12, %p718_p11  ;;  %p726_p4 = scmp.lt.u32.totalorder %s717_s16, %s927_s11 }
  0x15   : > { %p725_p3 = por %p724_p2, %p723_p1 }
  0x16   : > { %p721_p0 = pneg %p720_p13 }
  0x17   : > { %p727_p5 = por %p726_p4, %p725_p3 }
  0x19   : > { %p728_p6 = pnand %p727_p5, %p721_p0 }
  0x1b   : > { %731 = shalt.err (!%p728_p6)
}
  0x1c   : > { %s732_s6 = scalar_lea.vmem %s935_s13, 512  ;;  %s829_s7 = smov [#allocation4]  }
  0x1d   : > { %p733_p8 = scmp.ne.s32.totalorder %s935_s13, %s732_s6  ;;  %s737_s8 = sshll.u32 %s829_s7, 4  ;;  %s738_s8 = int_to_ptr.vmem [resolvable:$false] %s737_s8 }
  0x1e   : > { %s739_s9 = scalar_lea.vmem %s738_s8, 1024  ;;  %p740_p10 = scmp.lt.s32.totalorder %s935_s13, %s738_s8 }
  0x1f   : > { %p735_p11 = pnand %p733_p8, %p719_p12  ;;  %p741_p1 = scmp.lt.s32.totalorder %s739_s9, %s732_s6 }
  0x21   : > { %p736_p13 = pneg %p735_p11  ;;  %p742_p2 = por %p741_p1, %p740_p10 }
  0x23   : > { %p743_p3 = pnand %p742_p2, %p736_p13 }
  0x25   : > { %746 = shalt.err (!%p743_p3)
}
  0x26   : > { %s830_s10 = smov 256   ;;  %s831_s12 = smov 128  }
  0x27   : > { %s832_s16 = smov 8   ;;  %p220_p12 = scmp.lt.s32.totalorder %s827_s23, 3 }
  0x28   : > { %652 = dma.hbm_to_vmem [thread:$0]  (!%p931_p9), %s927_s11, 512, %s935_s13, %s938_s15, %s830_s10, %s831_s12, %s832_s16  }
  0x29   : > { %p1055_p0 = scmp.ge.s32.totalorder %s827_s23, 1 }
  0x2b   : > { %p221_p4 = pnand %p1055_p0, %p220_p12 }
  0x2c   : > { %s226_s17 = sand.u32 (!%p221_p4), 1, %s811_s19  }
  0x2d   : > { %224 = sbr.rel (%p221_p4) target bundleno = 720 (0x2d0), region = 40  ;;  %s610_s18 = sshll.u32 (!%p221_p4), %s226_s17, 5 }
  0x2e   : > { %s227_s26 = scalar_lea.sflag (!%p221_p4), [#allocation5], %s226_s17  ;;  %s230_s27 = scalar_lea.vmem (!%p221_p4), [#allocation4], %s610_s18 }
  0x34   : > { %798 = dma.done.wait (%p914_p7), %s227_s26, 512  }
  0x35   : > { %800 = vsyncadd (%p914_p7), %s227_s26, 4294966784  ;;  %p611_p10 = scmp.ne.s32.totalorder %s819_s21, 0 }
  0x36   : > { %vm257_vm0 = vcmask (!%p611_p10), 123904   ;;  %v833_v0 = vmov (!%p611_p10), 0.0   ;;  %v834_v1 = vmov (!%p611_p10), -inf  }
  0x37   : > { %256 = sbr.rel (%p611_p10) target bundleno = 62 (0x3e), region = 48  ;;  %258 = vst.msk [vmem:[#allocation2] sm:$0x3] (!%p611_p10), %vm257_vm0, %v833_v0  ;;  %259 = vst.msk [vmem:[#allocation3] sm:$0x3] (!%p611_p10), %vm257_vm0, %v834_v1 }
  0x3e PF: > { %v262_v2 = vld [vmem:[%s230_s27 + $0x10] sm:$0xff]  ;;  %v260_v3 = vld [vmem:[%s230_s27] sm:$0xff]  ;;  %v263_v4 = vld [vmem:[%s230_s27 + $0x18] sm:$0xff]  ;;  %v277_v6 = vlaneseq  ;;  %vm288_vm1 = vcmask 130112   ;;  %vm299_vm2 = vcmask 1041409   ;;  %vm303_vm3 = vcmask 123904  }
  0x3f   : > { %269 = vadd.xlane.f32.xlu1 %v262_v2  ;;  %265 = vadd.xlane.f32.xlu0 %v260_v3  ;;  %v261_v5 = vld [vmem:[%s230_s27 + $0x8] sm:$0xff]  ;;  %v264_v20 = vld [vmem:[#allocation2] sm:$0x3]  ;;  %v305_v33 = vld [vmem:[#allocation3] sm:$0x3]  ;;  %p612_p7 = scmp.ne.s32.totalorder %s819_s21, 1 }
  0x40   : > { %v278_v7 = vand.u32 127, %v277_v6  ;;  %v280_v8 = vshrl.u32 %v277_v6, 7  ;;  %v352_v38 = vld [vmem:[%s1047_s1] sm:$0xff] (!%p612_p7)  ;;  %v353_v39 = vld [vmem:[%s1047_s1 + $0x8] sm:$0xff] (!%p612_p7)  ;;  %v835_v40 = vmov (!%p612_p7), 0.0|0.0   ;;  %vm836_vm4 = vmmov (!%p612_p7), 0  }
  0x41   : > { %640 = vmatprep.subr.bf16.mxu0 (!%p612_p7), %v835_v40  ;;  %v641_v41 = vpack.c.bf16 (!%p612_p7), %v353_v39, %v352_v38  ;;  %v837_v42 = vmov (!%p612_p7), 0.0   ;;  %vm350_vm5 = vcmask (!%p612_p7), 1041408   ;;  %vm361_vm6 = vcmask (!%p612_p7), 130048   ;;  %v436_v48 = vld [vmem:[%s1049_s3] sm:$0x3] (!%p612_p7) }
  0x42   : > { %v283_v9 = vadd.s32 4294967288, %v278_v7  ;;  %v281_v12 = vsub.s32 %v278_v7, %v280_v8  ;;  %632 = vmatprep.mubr.msk.f32.mxu0 (!%p612_p7), %vm836_vm4, %v837_v42  ;;  %635 = vmatprep.subr.mxu1 (!%p612_p7), %v837_v42  ;;  %v613_v49 = vld [vmem:[%s1048_s2] ss:$0 sm:$0xff] (!%p612_p7)  ;;  %vm444_vm7 = vcmask (!%p612_p7), 15360  }
  0x43   : > { %271 = vadd.xlane.f32.xlu1 %v263_v4  ;;  %267 = vadd.xlane.f32.xlu0 %v261_v5  ;;  %v615_v54 = vld [vmem:[%s1050_s4] ss:$0 sm:$0xff] (!%p612_p7) }
  0x44   : > { %v286_v13 = vsub.s32 %v283_v9, %v280_v8  ;;  %637 = vmatprep.mubr.msk.f32.mxu1 (!%p612_p7), %vm836_vm4, %v837_v42  ;;  %642 = vmatpush3.bf16.msra.mxu0 (!%p612_p7), %v641_v41 }
  0x45   : > { %636 = vmatpush3.msk.msra.mxu1 (!%p612_p7), %vm350_vm5, %v436_v48 }
  0x47   : > { %308 = vmax.xlane.f32.xlu1 %v261_v5  ;;  %306 = vmax.xlane.f32.xlu0 %v260_v3 }
  0x4b   : > { %312 = vmax.xlane.f32.xlu1 %v263_v4  ;;  %310 = vmax.xlane.f32.xlu0 %v262_v2 }
  0xcc   : > { %v270_v10 = vpop.xlane.xlu1 %269  ;;  %v266_v11 = vpop.xlane.xlu0 %265 }
  0xcd   : > { %v293_v16 = vrot.slane %v270_v10, %v281_v12  ;;  %v282_v17 = vrot.slane %v266_v11, %v281_v12 }
  0xd0   : > { %v272_v14 = vpop.xlane.xlu1 %271  ;;  %v268_v15 = vpop.xlane.xlu0 %267 }
  0xd1   : > { %v297_v18 = vrot.slane %v272_v14, %v286_v13  ;;  %v287_v19 = vrot.slane %v268_v15, %v286_v13 }
  0xd3   : > { %v298_v21 = vsel %vm288_vm1, %v297_v18, %v293_v16  ;;  %v289_v22 = vsel %vm288_vm1, %v287_v19, %v282_v17 }
  0xd4   : > { %v300_v23 = vsel %vm299_vm2, %v298_v21, %v289_v22  ;;  %v309_v24 = vpop.xlane.xlu1 %308  ;;  %v307_v25 = vpop.xlane.xlu0 %306 }
  0xd5   : > { %v302_v26 = vadd.f32 %v300_v23, %v264_v20  ;;  %v325_v27 = vrot.slane %v309_v24, %v286_v13  ;;  %v321_v28 = vrot.slane %v307_v25, %v281_v12 }
  0xd7   : > { %304 = vst.msk [vmem:[#allocation2] sm:$0x3] %vm303_vm3, %v302_v26  ;;  %v326_v34 = vsel %vm288_vm1, %v325_v27, %v321_v28 }
  0xd8   : > { %v313_v29 = vpop.xlane.xlu1 %312  ;;  %v311_v30 = vpop.xlane.xlu0 %310 }
  0xd9   : > { %v334_v31 = vrot.slane %v313_v29, %v286_v13  ;;  %v330_v32 = vrot.slane %v311_v30, %v281_v12  ;;  %343 = sbr.rel (%p612_p7) target bundleno = 695 (0x2b7), region = 52 }
  0xdb   : > { %v335_v35 = vsel %vm288_vm1, %v334_v31, %v330_v32 }
  0xdc   : > { %v336_v36 = vsel %vm299_vm2, %v335_v35, %v326_v34 }
  0xdd   : > { %v338_v37 = vmax.f32 %v305_v33, %v336_v36 }
  0xde   : > { %v344_v43 = vld [vmem:[#allocation2] sm:$0x3] (!%p612_p7) }
  0xdf   : > { %339 = vst.msk [vmem:[#allocation3] sm:$0x3] %vm303_vm3, %v338_v37  ;;  %v345_v45 = vmul.f32 (!%p612_p7), 0.00390625, %v344_v43 }
  0xe6   : > { %v346_v44 = vld [vmem:[#allocation3] sm:$0x3] }
  0xe7   : > { %v348_v46 = vrot.slane %v346_v44, 6 }
  0xe9   : > { %v351_v47 = vsel %vm350_vm5, %v345_v45, %v348_v46 }
  0xea   : > { %633 = vmatmul.mubr.msk.f32.vlgmr.msra.gmra.mrb[0].mxu0 %vm361_vm6, %v351_v47 }
 0x1bd   : > { %v431_v50 = vpop.f32.mrb[0].mxu0 }
 0x1be   : > { %v432_v51 = vadd.f32 %v613_v49, %v431_v50  ;;  %v634_v52 = vpop.f32.mrb[1].mxu0 }
 0x1c0   : > { %v435_v53 = vmax.f32 %v432_v51, 0.0 }
 0x1c2   : > { %638 = vmatmul.mubr.msk.f32.vlgmr.msra.gmra.mrb[0].mxu1 %vm444_vm7, %v435_v53 }
 0x295   : > { %v517_v55 = vpop.f32.mrb[0].mxu1 }
 0x296   : > { %v518_v56 = vadd.f32 %v615_v54, %v517_v55  ;;  %v639_v57 = vpop.f32.mrb[1].mxu1 }
 0x298   : > { %v522_v58 = vrot.slane %v518_v56, 2 }
 0x29a   : > { %v524_v59 = vadd.f32 %v522_v58, %v518_v56 }
 0x29c   : > { %v618_v60 = vmul.f32 -1.442695, %v524_v59 }
 0x29e   : > { %713 = vpow2.f32 %v618_v60 }
 0x2a8   : > { %v714_v61 = vpop.eup %713 }
 0x2a9   : > { %v528_v62 = vadd.f32 1.0, %v714_v61 }
 0x2ab   : > { %715 = vrcp.f32 %v528_v62 }
 0x2b5   : > { %v716_v63 = vpop.eup %715 }
 0x2b6   : > { %531 = vst.msk [vmem:[#allocation7] sm:$0x3] %vm303_vm3, %v716_v63 }
 0x2b7 PF: > { %p1002_p9 = scmp.eq.s32.totalorder %s604_s24, 1  ;;  %s838_s10 = smov [#allocation7]  }
 0x2b8   : > { %s541_s12 = sshll.u32 %s838_s10, 4  ;;  %s542_s12 = int_to_ptr.vmem [resolvable:$true] %s541_s12 }
 0x2b9   : > { %s747_s16 = scalar_lea.vmem %s542_s12, 32  ;;  %p754_p11 = scmp.lt.s32.totalorder %s542_s12, %s542_s12 }
 0x2ba   : > { %p748_p5 = scmp.ne.s32.totalorder %s542_s12, %s747_s16  ;;  %p755_p13 = scmp.lt.s32.totalorder %s747_s16, %s747_s16 }
 0x2bc   : > { %p749_p6 = pnand %p748_p5, %p1002_p9  ;;  %p756_p1 = por %p755_p13, %p754_p11 }
 0x2be   : > { %p750_p8 = pneg %p749_p6 }
 0x2c0   : > { %p757_p2 = pnand %p756_p1, %p750_p8 }
 0x2c2   : > { %760 = shalt.err (!%p757_p2)
}
 0x2c3   : > { %s761_s24 = scalar_lea.hbm %s1051_s5, 32 }
 0x2c4   : > { %p762_p3 = scmp.ne.s32.totalorder %s1051_s5, %s761_s24  ;;  %p767_p4 = scmp.lt.u32.totalorder %s761_s24, %s1051_s5 }
 0x2c6   : > { %p763_p12 = pnand %p762_p3, %p1002_p9 }
 0x2c8   : > { %p764_p0 = pneg %p763_p12 }
 0x2ca   : > { %p769_p10 = pnand %p767_p4, %p764_p0 }
 0x2cc   : > { %772 = shalt.err (!%p769_p10)
}
 0x2cd   : > { %646 = dma.vmem_to_hbm [thread:$0]  (%p1002_p9), %s542_s12, 32, %s1051_s5, [#allocation6]  }
 0x2ce   : > { %802 = dma.done.wait (%p1002_p9), [#allocation6], 32  }
 0x2cf   : > { %804 = vsyncadd (%p1002_p9), [#allocation6], 4294967264 }
 0x2d0 PF: > { %s19_s23 = sadd.s32 1, %s827_s23   ;;  %s1057_s18 = smov %s811_s19 }
 0x2d1   : > { %p16_p7 = scmp.ge.s32.totalorder %s19_s23, 4   ;;  %s1058_s19 = smov %s815_s20 }
 0x2d2   : > { %s1059_s20 = smov %s920_s30  ;;  %s1060_s21 = smov %s823_s22 }
 0x2d3   : > { %s1061_s22 = smov %s1063_s25  ;;  %18 = sbr.rel (!%p16_p7) target bundleno = 5 (0x5), region = 86 }
 0x2da   :  { %554 = vsyncpa [#allocation5], 1 }
 0x2db   :  { %556 = vsyncpa [#allocation5 + $0x1], 1 }
 0x2dc   :  { %557 = vsyncpa [#allocation6], 1 }
 0x2dd   :  { %559 = vsyncpa [#allocation6 + $0x1], 1 }

</bundles_post_ra>
